<compile_context>
chip_gen: v5e
topology: v5e:2x2
jax: 0.10.0
libtpu: 0.0.40
codegen_flags: <defaults>
</compile_context>

<pallas_src>
import functools

import jax
import jax.numpy as jnp
from jax.experimental import pallas as pl
from jax.experimental.pallas import tpu as pltpu

LANE = 128
SUBLANE = 8
_NEG = -1e30  # pad value for bias columns -> excluded from max/sum (exp underflows to 0)


def _round_up(x: int, m: int) -> int:
    return (x + m - 1) // m * m


def _categorical_kernel(x_ref, wt_ref, b_ref, logits_ref):
    """Fused linear + log-softmax normalization (Categorical logits).

    x_ref      : (TB, D_in)        VMEM tile of activations
    wt_ref     : (D_in, D_out_pad) VMEM, W transposed + lane-padded (grid-invariant)
    b_ref      : (1,  D_out_pad)   VMEM, bias (+_NEG in padded columns)
    logits_ref : (TB, D_out_pad)   VMEM output tile (normalized logits; pad cols garbage)
    """
    # Linear layer on the MXU; f32 accumulation regardless of operand dtype.
    raw = jnp.dot(x_ref[...], wt_ref[...], preferred_element_type=jnp.float32)
    raw = raw + b_ref[...].astype(jnp.float32)           # padded cols ~= -1e30

    # Categorical logits normalization: logits - logsumexp(logits, -1).
    m = jnp.max(raw, axis=-1, keepdims=True)              # pad cols never win the max
    shifted = raw - m                                      # pad cols ~= -1e30
    log_sum = jnp.log(jnp.sum(jnp.exp(shifted), axis=-1, keepdims=True))
    # raw - (log_sum + m) == shifted - log_sum : one fewer full-tile subtract.
    logits_ref[...] = (shifted - log_sum).astype(logits_ref.dtype)  # lane-dense store


def prepare_params(weight, bias, param_dtype=jnp.float32):
    """One-time parameter prep (do NOT call per forward).

    weight: (D_out, D_in), bias: (D_out,)
    Returns wt_pad: (D_in, D_out_pad), b_pad: (1, D_out_pad), D_out_pad = roundup(D_out, 128).
    """
    d_out, d_in = weight.shape
    d_out_pad = _round_up(d_out, LANE)
    wt = jnp.asarray(weight, param_dtype).T                       # (D_in, D_out)
    wt_pad = jnp.zeros((d_in, d_out_pad), param_dtype).at[:, :d_out].set(wt)
    b_pad = jnp.full((1, d_out_pad), _NEG, jnp.float32).at[0, :d_out].set(
        jnp.asarray(bias, jnp.float32))
    return wt_pad, b_pad


def _categorical_forward_padded(x, wt_pad, b_pad, *, block_batch):
    batch, d_in = x.shape
    d_out_pad = wt_pad.shape[1]

    # Batch tile: multiple of 8 sublanes, clamped so tiny batches stay single-block.
    tb = min(block_batch, _round_up(batch, SUBLANE))
    grid = (pl.cdiv(batch, tb),)

    return pl.pallas_call(
        _categorical_kernel,
        out_shape=jax.ShapeDtypeStruct((batch, d_out_pad), jnp.float32),
        grid_spec=pltpu.PrefetchScalarGridSpec(
            num_scalar_prefetch=0,
            grid=grid,
            in_specs=[
                pl.BlockSpec((tb, d_in), lambda i: (i, 0)),          # streamed per tile
                pl.BlockSpec((d_in, d_out_pad), lambda i: (0, 0)),   # resident weight
                pl.BlockSpec((1, d_out_pad), lambda i: (0, 0)),      # resident bias
            ],
            out_specs=pl.BlockSpec((tb, d_out_pad), lambda i: (i, 0)),
        ),
        compiler_params=pltpu.CompilerParams(
            dimension_semantics=("parallel",),   # shard batch tiles across megacore TCs
        ),
    )(x, wt_pad, b_pad)


@functools.partial(jax.jit, static_argnames=("num_outputs", "block_batch"))
def categorical_forward(x, wt_pad, b_pad, num_outputs, block_batch=256):
    """x: (B, D_in). Returns normalized Categorical logits of shape (B, num_outputs)."""
    out = _categorical_forward_padded(x, wt_pad, b_pad, block_batch=block_batch)
    return out[:, :num_outputs]


def orthogonal_init(key, rows, cols, gain=0.01, dtype=jnp.float32):
    """Deterministic equivalent of nn.init.orthogonal_ with the given gain."""
    flat = jax.random.normal(key, (max(rows, cols), min(rows, cols)), dtype=jnp.float32)
    q, r = jnp.linalg.qr(flat)
    d = jnp.sign(jnp.diagonal(r))
    q = q * d[None, :]
    if rows < cols:
        q = q.T
    return (gain * q[:rows, :cols]).astype(dtype)


def _reference_logits(x, weight, bias):
    raw = x @ weight.T + bias
    return raw - jax.scipy.special.logsumexp(raw, axis=-1, keepdims=True)


if __name__ == "__main__":
    num_inputs, num_outputs = 32, 16

    key = jax.random.PRNGKey(0)
    k_x, k_w, k_x2 = jax.random.split(key, 3)

    weight = orthogonal_init(k_w, num_outputs, num_inputs, gain=0.01)  # (D_out, D_in)
    bias = jnp.zeros((num_outputs,), dtype=jnp.float32)                # constant 0 init
    wt_pad, b_pad = prepare_params(weight, bias)                       # one-time prep

    # --- small single-tile case (batch=8) ---
    x = jax.random.normal(k_x, (8, num_inputs), dtype=jnp.float32)
    logits = categorical_forward(x, wt_pad, b_pad, num_outputs)
    jax.block_until_ready(logits)
    ref = _reference_logits(x, weight, bias)
    assert logits.shape == (8, num_outputs)
    assert jnp.allclose(logits, ref, atol=1e-5, rtol=1e-5), "mismatch vs reference (batch=8)"

    # --- multi-tile case with a partial final batch block (exercises pipelining path) ---
    x2 = jax.random.normal(k_x2, (260, num_inputs), dtype=jnp.float32)
    logits2 = categorical_forward(x2, wt_pad, b_pad, num_outputs, block_batch=128)
    jax.block_until_ready(logits2)
    ref2 = _reference_logits(x2, weight, bias)
    assert logits2.shape == (260, num_outputs)
    assert jnp.allclose(logits2, ref2, atol=1e-5, rtol=1e-5), "mismatch vs reference (batch=260)"

    print("KERNEL_OK")
</pallas_src>

<mosaic_0001>
module attributes {stable_mosaic.version = 11 : i64} {
  func.func @_categorical_kernel(%arg0: i32, %arg1: memref<8x32xf32, #tpu.memory_space<vmem>>, %arg2: memref<32x128xf32, #tpu.memory_space<vmem>>, %arg3: memref<1x128xf32, #tpu.memory_space<vmem>>, %arg4: memref<8x128xf32, #tpu.memory_space<vmem>>) attributes {dimension_semantics = [#tpu.dimension_semantics<parallel>], iteration_bounds = array<i64: 1>, scalar_prefetch = 0 : i64, scratch_operands = 0 : i64, tpu.core_type = #tpu.core_type<tc>, window_params = [{transform_indices = @transform_0, window_bounds = array<i64: 8, 32>}, {pipeline_mode = #tpu.pipeline_mode<synchronous>, transform_indices = @transform_1, window_bounds = array<i64: 32, 128>}, {pipeline_mode = #tpu.pipeline_mode<synchronous>, transform_indices = @transform_2, window_bounds = array<i64: 1, 128>}, {transform_indices = @transform_3, window_bounds = array<i64: 8, 128>}]} {
    %c0 = arith.constant 0 : index
    %c0_0 = arith.constant 0 : index
    %0 = vector.load %arg1[%c0, %c0_0] : memref<8x32xf32, #tpu.memory_space<vmem>>, vector<8x32xf32>
    %c0_1 = arith.constant 0 : index
    %c0_2 = arith.constant 0 : index
    %1 = vector.load %arg2[%c0_1, %c0_2] : memref<32x128xf32, #tpu.memory_space<vmem>>, vector<32x128xf32>
    %cst = arith.constant dense<0.000000e+00> : vector<8x128xf32>
    %2 = tpu.matmul %0, %1, %cst {dimension_numbers = #tpu.dot_dimension_numbers<[1], [0], [0], [1], [0, 0, 1, 1], [], []>} : vector<8x32xf32>, vector<32x128xf32>, vector<8x128xf32> -> vector<8x128xf32>
    %c0_3 = arith.constant 0 : index
    %c0_4 = arith.constant 0 : index
    %3 = vector.load %arg3[%c0_3, %c0_4] : memref<1x128xf32, #tpu.memory_space<vmem>>, vector<1x128xf32>
    %4 = vector.broadcast %3 : vector<1x128xf32> to vector<8x128xf32>
    %5 = arith.addf %2, %4 : vector<8x128xf32>
    %cst_5 = arith.constant dense<0xFF800000> : vector<8xf32>
    %6 = vector.multi_reduction <maximumf>, %5, %cst_5 [1] : vector<8x128xf32> to vector<8xf32>
    %7 = vector.shape_cast %6 : vector<8xf32> to vector<8x1xf32>
    %8 = vector.broadcast %7 : vector<8x1xf32> to vector<8x128xf32>
    %9 = arith.subf %5, %8 : vector<8x128xf32>
    %10 = math.exp %9 : vector<8x128xf32>
    %cst_6 = arith.constant dense<0.000000e+00> : vector<8xf32>
    %11 = vector.multi_reduction <add>, %10, %cst_6 [1] : vector<8x128xf32> to vector<8xf32>
    %12 = vector.shape_cast %11 : vector<8xf32> to vector<8x1xf32>
    %13 = math.log %12 : vector<8x1xf32>
    %14 = vector.broadcast %13 : vector<8x1xf32> to vector<8x128xf32>
    %15 = arith.subf %9, %14 : vector<8x128xf32>
    %c0_7 = arith.constant 0 : index
    %c0_8 = arith.constant 0 : index
    %16 = vector.load %arg4[%c0_7, %c0_8] : memref<8x128xf32, #tpu.memory_space<vmem>>, vector<8x128xf32>
    tpu.vector_store %arg4[%c0_7, %c0_8], %15 {strides = array<i32>} : memref<8x128xf32, #tpu.memory_space<vmem>>, vector<8x128xf32>,
    return
  }
  func.func @transform_0(%arg0: i32) -> (i32, i32) {
    %c0_i32 = arith.constant 0 : i32
    %c0_i32_0 = arith.constant 0 : i32
    return %arg0, %c0_i32 : i32, i32
  }
  func.func @transform_1(%arg0: i32) -> (i32, i32) {
    %c0_i32 = arith.constant 0 : i32
    %c0_i32_0 = arith.constant 0 : i32
    %c0_i32_1 = arith.constant 0 : i32
    return %c0_i32, %c0_i32_0 : i32, i32
  }
  func.func @transform_2(%arg0: i32) -> (i32, i32) {
    %c0_i32 = arith.constant 0 : i32
    %c0_i32_0 = arith.constant 0 : i32
    %c0_i32_1 = arith.constant 0 : i32
    return %c0_i32, %c0_i32_0 : i32, i32
  }
  func.func @transform_3(%arg0: i32) -> (i32, i32) {
    %c0_i32 = arith.constant 0 : i32
    %c0_i32_0 = arith.constant 0 : i32
    return %arg0, %c0_i32 : i32, i32
  }
}

</mosaic_0001>

<bundles_post_ra>
// kernel: categorical_forward.1
= control target key start
LH: loop header
LB: loop body
LE: loop exit
PB: predicated region body
PF: predicated region fallthrough
CT: control target
= control target key end

     0   :  { %8 = vsyncpa [#allocation3], 0  ;;  %s233_s0 = inlined_call_operand.hbm [shape: f32[8,32], index: 0, kind: input, shape index: {}]   ;;  %s234_s1 = inlined_call_operand.hbm [shape: f32[32,128], index: 1, kind: input, shape index: {}]   ;;  %s235_s2 = inlined_call_operand.vmem [shape: f32[1,128], index: 2, kind: input, shape index: {}]   ;;  %s236_s3 = inlined_call_operand.hbm [shape: f32[8,128], index: 3, kind: output, shape index: {}]  }
   0x1   :  { %9 = vsyncpa [#allocation6], 0 }
   0x2   :  { %10 = vsyncpa [#allocation4], 0  ;;  %s16_s14 = sshll.u32 %s233_s0, 4  ;;  %s196_s15 = smov [#allocation2]   ;;  %s17_s14 = int_to_ptr.hbm [resolvable:$true] %s16_s14 }
   0x3   :  { %s18_s16 = sshll.u32 %s196_s15, 4  ;;  %s26_s19 = sshll.u32 %s234_s1, 4  ;;  %s19_s16 = int_to_ptr.vmem [resolvable:$true] %s18_s16  ;;  %s27_s19 = int_to_ptr.hbm [resolvable:$true] %s26_s19 }
   0x4   :  { %21 = dma.hbm_to_vmem [thread:$0]  %s17_s14, 128, %s19_s16, [#allocation3]  }
   0x5   :  { %s197_s20 = smov [#allocation5]   ;;  %s198_s22 = smov 128  }
   0x6   :  { %s28_s21 = sshll.u32 %s197_s20, 4  ;;  %s199_s23 = smov 8   ;;  %s29_s21 = int_to_ptr.vmem [resolvable:$true] %s28_s21 }
   0x7   :  { %34 = dma.hbm_to_vmem [thread:$0]  %s27_s19, 512, %s29_s21, [#allocation6], %s198_s22, %s198_s22, %s199_s23  }
   0x8   :  { %190 = dma.done.wait [#allocation3], 128  }
   0x9   :  { %191 = vsyncadd [#allocation3], 4294967168 }
   0xa   :  { %192 = dma.done.wait [#allocation6], 512  }
   0xb   :  { %193 = vsyncadd [#allocation6], 4294966784  ;;  %v49_v0 = vld [vmem:[#allocation5 + $0x18] sm:$0xff]  ;;  %v48_v1 = vld [vmem:[#allocation5 + $0x10] sm:$0xff]  ;;  %vm54_vm0 = vcmask 261120   ;;  %s200_s24 = smov [#allocation7]  }
   0xc   :  { %70 = vmatpush.msra.mxu0 %v49_v0  ;;  %v47_v2 = vld [vmem:[#allocation5 + $0x8] sm:$0xff]  ;;  %v46_v3 = vld [vmem:[#allocation5] sm:$0xff]  ;;  %v45_v4 = vld [vmem:[#allocation2] sm:$0xff]  ;;  %s94_s25 = sshll.u32 %s200_s24, 4  ;;  %s96_s28 = sshll.u32 %s236_s3, 4  ;;  %s95_s25 = int_to_ptr.vmem [resolvable:$true] %s94_s25  ;;  %s97_s28 = int_to_ptr.hbm [resolvable:$true] %s96_s28 }
   0xd   :  { %v113_v5 = vld [vmem:[%s235_s2] ss:$0 sm:$0xff] }
   0xe   :  { %71 = vmatpush.msra.mxu0 %v48_v1 }
  0x10   :  { %72 = vmatpush.msra.mxu0 %v47_v2 }
  0x12   :  { %73 = vmatpush.msra.mxu0 %v46_v3 }
  0x13   :  { %107 = vmatmul.msk.f32.vlgmr.msra.gmra.mxu0 %vm54_vm0, %v45_v4 }
  0x90   :  { %v75_v6 = vpop.f32.mrf.mxu0 }
  0x91   :  { %v76_v7 = vadd.f32 %v113_v5, %v75_v6 }
  0x93   :  { %78 = vmax.xlane.f32.xlu0 %v76_v7 }
 0x106   :  { %v79_v8 = vpop.xlane.xlu0 %78 }
 0x107   :  { %v80_v9 = vsub.f32 %v76_v7, %v79_v8 }
 0x109   :  { %v81_v10 = vmul.f32 1.442695, %v80_v9 }
 0x10b   :  { %114 = vpow2.f32 %v81_v10 }
 0x111   :  { %v115_v11 = vpop.eup %114 }
 0x112   :  { %83 = vadd.xlane.f32.xlu0 %v115_v11 }
 0x185   :  { %v84_v12 = vpop.xlane.xlu0 %83 }
 0x186   :  { %116 = vlog2.f32 %v84_v12 }
 0x18c   :  { %v117_v13 = vpop.eup %116 }
 0x18d   :  { %v86_v14 = vmul.f32 0.6931472, %v117_v13 }
 0x18f   :  { %v87_v15 = vsub.f32 %v80_v9, %v86_v14 }
 0x191   :  { %88 = vst [vmem:[#allocation7] sm:$0xff] %v87_v15 }
 0x192   :  { %99 = dma.vmem_to_hbm [thread:$0]  %s95_s25, 128, %s97_s28, [#allocation4]  }
 0x193   :  { %194 = dma.done.wait [#allocation4], 128  }
 0x194   :  { %195 = vsyncadd [#allocation4], 4294967168 }
 0x195   :  { %104 = vsyncpa [#allocation3], 1 }
 0x196   :  { %105 = vsyncpa [#allocation6], 1 }
 0x197   :  { %106 = vsyncpa [#allocation4], 1 }

</bundles_post_ra>
